<compile_context>
chip_gen: v5e
topology: v5e:2x2
jax: 0.10.0
libtpu: 0.0.40
codegen_flags: <defaults>
</compile_context>

<pallas_src>
import jax
import jax.numpy as jnp
from jax.experimental import pallas as pl
from jax.experimental.pallas import tpu as pltpu

_TARGET_BLOCK_BYTES = 2 * 1024 * 1024          # ~2 MiB per pipeline buffer
_LANE = 128
_COL_CANDIDATES = (2048, 1024, 512, 256, 128)  # lane-dense (multiples of 128)


def _hsigmoid_kernel(x_ref, o_ref):
    # out = relu6(x + 3) / 6 == clamp(x + 3, 0, 6) * (1/6)
    # Compute in f32 (v5e has no bf16 VALU); store back in the input dtype so bf16
    # inputs keep their halved HBM traffic.
    x = x_ref[...].astype(jnp.float32)
    y = jnp.minimum(jnp.maximum(x + 3.0, 0.0), 6.0) * (1.0 / 6.0)
    o_ref[...] = y.astype(o_ref.dtype)


def _sublane(itemsize):
    # Native sublane tile: 8 for 4-byte, 16 for 2-byte, 32 for 1-byte dtypes.
    return max(8, 32 // itemsize)


def _run_2d(x2):
    rows, cols = x2.shape
    itemsize = x2.dtype.itemsize
    sub = _sublane(itemsize)

    # Row block: ~_TARGET_BLOCK_BYTES per buffer, sublane-aligned.  The last
    # (possibly partial) row-block is masked by Pallas, so `rows` does not need to be
    # padded up to a multiple of the block.
    desired = max(sub, ((_TARGET_BLOCK_BYTES // itemsize) // cols) // sub * sub)
    if rows <= sub:
        br = rows                                # block == full row extent (legal)
    else:
        br = min(desired, (rows // sub) * sub)   # sublane-aligned, <= rows
    grid = (pl.cdiv(rows, br),)

    n_elems = rows * cols
    cost = pl.CostEstimate(flops=4 * n_elems, transcendentals=0,
                           bytes_accessed=2 * n_elems * itemsize)

    return pl.pallas_call(
        _hsigmoid_kernel,
        out_shape=jax.ShapeDtypeStruct((rows, cols), x2.dtype),
        grid=grid,
        in_specs=[pl.BlockSpec((br, cols), lambda i: (i, 0))],
        out_specs=pl.BlockSpec((br, cols), lambda i: (i, 0)),
        compiler_params=pltpu.CompilerParams(
            dimension_semantics=("parallel",),    # v7x: shard row-blocks over both TCs
            vmem_limit_bytes=32 * 1024 * 1024,
        ),
        cost_estimate=cost,
    )(x2)


@jax.jit
def hsigmoid(x):
    """Elementwise Hsigmoid matching F.relu6(x + 3) / 6, any shape / dtype."""
    orig_shape = x.shape
    n = x.size
    if n == 0:
        return x

    cols = next((c for c in _COL_CANDIDATES if n % c == 0), None)
    if cols is not None:
        # Fast path (covers every 128-aligned size): pure reshape, zero extra copies.
        y2 = _run_2d(x.reshape(n // cols, cols))
        return y2.reshape(orig_shape)

    # Ragged path (n not a multiple of 128): pad the flat array by < 128 elements up
    # to a lane-dense slab and slice back.  This costs one extra HBM round trip; real
    # deblur activations take the zero-copy fast path above.
    cols = _LANE
    rows = pl.cdiv(n, cols)
    xf = jnp.pad(jnp.ravel(x), (0, rows * cols - n))
    y2 = _run_2d(xf.reshape(rows, cols))
    return y2.reshape(-1)[:n].reshape(orig_shape)


def _reference_hsigmoid(x):
    # Pure-JAX reference mirroring F.relu6(x + 3) / 6.
    return jnp.clip(x.astype(jnp.float32) + 3.0, 0.0, 6.0) / 6.0


if __name__ == "__main__":
    key = jax.random.PRNGKey(0)
    k1, k2, k3 = jax.random.split(key, 3)

    # Primary test: small NCHW tensor, values spanning both clamped regions and the
    # linear middle.  n = 2048 -> zero-copy fast path, single (1, 2048) block.
    x = jax.random.uniform(k1, (2, 4, 16, 16), jnp.float32, minval=-6.0, maxval=6.0)
    out = jax.block_until_ready(hsigmoid(x))
    assert out.shape == x.shape
    assert bool(jnp.all(jnp.isfinite(out)))
    assert bool(jnp.all((out >= 0.0) & (out <= 1.0)))
    assert bool(jnp.allclose(out, _reference_hsigmoid(x), atol=1e-6, rtol=1e-6))

    # 128-aligned size whose row count is not a sublane multiple -> zero-copy path
    # with a masked partial row-block (grid of 2).
    x3 = jax.random.uniform(k3, (2, 3, 11, 128), jnp.float32, minval=-8.0, maxval=8.0)
    out3 = jax.block_until_ready(hsigmoid(x3))
    assert out3.shape == x3.shape
    assert bool(jnp.allclose(out3, _reference_hsigmoid(x3), atol=1e-6, rtol=1e-6))

    # Ragged (non-128-aligned) bf16 input -> padded path, bf16-native sublane blocks,
    # in-kernel f32 compute with dtype-preserving store.
    x2 = jax.random.normal(k2, (3, 5, 17, 33), jnp.float32).astype(jnp.bfloat16)
    out2 = jax.block_until_ready(hsigmoid(x2))
    assert out2.shape == x2.shape and out2.dtype == jnp.bfloat16
    ref2 = _reference_hsigmoid(x2).astype(jnp.bfloat16)
    assert bool(jnp.allclose(out2.astype(jnp.float32), ref2.astype(jnp.float32),
                             atol=1e-2, rtol=1e-2))

    print("KERNEL_OK")
</pallas_src>

<mosaic_0001>
module attributes {stable_mosaic.version = 11 : i64} {
  func.func @_hsigmoid_kernel(%arg0: i32, %arg1: memref<1x2048xf32, #tpu.memory_space<vmem>>, %arg2: memref<1x2048xf32, #tpu.memory_space<vmem>>) attributes {dimension_semantics = [#tpu.dimension_semantics<parallel>], iteration_bounds = array<i64: 1>, scalar_prefetch = 0 : i64, scratch_operands = 0 : i64, tpu.core_type = #tpu.core_type<tc>, window_params = [{transform_indices = @transform_0, window_bounds = array<i64: 1, 2048>}, {transform_indices = @transform_1, window_bounds = array<i64: 1, 2048>}]} {
    %c0 = arith.constant 0 : index
    %c0_0 = arith.constant 0 : index
    %0 = vector.load %arg1[%c0, %c0_0] : memref<1x2048xf32, #tpu.memory_space<vmem>>, vector<1x2048xf32>
    %cst = arith.constant 3.000000e+00 : f32
    %1 = vector.broadcast %cst : f32 to vector<1x2048xf32>
    %2 = arith.addf %0, %1 : vector<1x2048xf32>
    %cst_1 = arith.constant 0.000000e+00 : f32
    %3 = vector.broadcast %cst_1 : f32 to vector<1x2048xf32>
    %4 = arith.maximumf %2, %3 : vector<1x2048xf32>
    %cst_2 = arith.constant 6.000000e+00 : f32
    %5 = vector.broadcast %cst_2 : f32 to vector<1x2048xf32>
    %6 = arith.minimumf %4, %5 : vector<1x2048xf32>
    %cst_3 = arith.constant 0.166666672 : f32
    %7 = vector.broadcast %cst_3 : f32 to vector<1x2048xf32>
    %8 = arith.mulf %6, %7 : vector<1x2048xf32>
    %c0_4 = arith.constant 0 : index
    %c0_5 = arith.constant 0 : index
    %9 = vector.load %arg2[%c0_4, %c0_5] : memref<1x2048xf32, #tpu.memory_space<vmem>>, vector<1x2048xf32>
    tpu.vector_store %arg2[%c0_4, %c0_5], %8 {strides = array<i32>} : memref<1x2048xf32, #tpu.memory_space<vmem>>, vector<1x2048xf32>,
    return
  }
  func.func @transform_0(%arg0: i32) -> (i32, i32) {
    %c0_i32 = arith.constant 0 : i32
    %c0_i32_0 = arith.constant 0 : i32
    return %arg0, %c0_i32 : i32, i32
  }
  func.func @transform_1(%arg0: i32) -> (i32, i32) {
    %c0_i32 = arith.constant 0 : i32
    %c0_i32_0 = arith.constant 0 : i32
    return %arg0, %c0_i32 : i32, i32
  }
}

</mosaic_0001>

<bundles_post_ra>
// kernel: hsigmoid.1
= control target key start
LH: loop header
LB: loop body
LE: loop exit
PB: predicated region body
PF: predicated region fallthrough
CT: control target
= control target key end

     0   :  { %s46_s0 = inlined_call_operand.vmem [shape: f32[1,2048], index: 0, kind: input, shape index: {}]   ;;  %s47_s1 = inlined_call_operand.vmem [shape: f32[1,2048], index: 1, kind: output, shape index: {}]  }
   0x1   :  { %v8_v0 = vld [vmem:[%s46_s0] sm:$0xff]  ;;  %v9_v1 = vld [vmem:[%s46_s0 + $0x8] sm:$0xff] }
   0x2   :  { %v10_v2 = vadd.f32 3.0, %v8_v0  ;;  %v11_v3 = vadd.f32 3.0, %v9_v1 }
   0x4   :  { %v12_v4 = vmax.f32 %v10_v2, 0.0  ;;  %v13_v5 = vmax.f32 %v11_v3, 0.0 }
   0x6   :  { %v14_v6 = vmin.f32 %v12_v4, 6.0  ;;  %v15_v7 = vmin.f32 %v13_v5, 6.0 }
   0x8   :  { %v16_v8 = vmul.f32 0.16666667, %v14_v6  ;;  %v17_v9 = vmul.f32 0.16666667, %v15_v7 }
   0xa   :  { %18 = vst [vmem:[%s47_s1] sm:$0xff] %v16_v8 }
   0xb   :  { %19 = vst [vmem:[%s47_s1 + $0x8] sm:$0xff] %v17_v9 }

</bundles_post_ra>
